<compile_context>
chip_gen: v5e
topology: v5e:2x2
jax: 0.10.0
libtpu: 0.0.40
codegen_flags: <defaults>
</compile_context>

<pallas_src>
import jax
import jax.numpy as jnp
from jax import lax
from jax.experimental import pallas as pl
from jax.experimental.pallas import tpu as pltpu

# ---- problem sizes (small, consistent with the RPS project) ----
B = 8         # batch
STATE = 16    # DQN state size
HID = 32      # DQN hidden size
ACT = 3       # actions: rock / paper / scissors
ACT_PAD = 32  # action dim padded to the DQN lane width (extra cols are zero)
T = 8         # LSTM sequence length
LIN = 3       # LSTM input size (one-hot previous move)
LIN_PAD = 8   # LIN padded to a sublane multiple
LHID = 32     # LSTM hidden size
GATES = 4 * LHID  # 128 stacked gate lanes (i, f, g, o)

# static row offsets inside the packed DQN/head buffer (all multiples of 8)
_W1, _B1, _W2, _B2, _W3, _B3, _WFC, _BFC = 0, 16, 24, 56, 64, 96, 104, 136
DQN_ROWS = 144
# static row offsets inside the packed LSTM buffer
_WIH, _WHH, _BG = 0, 8, 40
LSTM_ROWS = 48


def ensemble_kernel(x_dqn_ref, x_lstm_ref, dqn_p_ref, lstm_p_ref, out_ref):
    f32 = jnp.float32

    # ---- unpack parameters (static, 8-row-aligned slices of VMEM refs) ----
    w1 = dqn_p_ref[_W1:_W1 + STATE, :]
    b1 = dqn_p_ref[_B1:_B1 + 1, :]
    w2 = dqn_p_ref[_W2:_W2 + HID, :]
    b2 = dqn_p_ref[_B2:_B2 + 1, :]
    w3 = dqn_p_ref[_W3:_W3 + HID, :]          # (HID, ACT_PAD), cols >= ACT are 0
    b3 = dqn_p_ref[_B3:_B3 + 1, :]
    w_fc = dqn_p_ref[_WFC:_WFC + LHID, :]     # (LHID, ACT_PAD)
    b_fc = dqn_p_ref[_BFC:_BFC + 1, :]

    w_ih = lstm_p_ref[_WIH:_WIH + LIN_PAD, :]   # (LIN_PAD, 4*LHID), pad rows 0
    w_hh = lstm_p_ref[_WHH:_WHH + LHID, :]      # (LHID, 4*LHID)
    b_g = lstm_p_ref[_BG:_BG + 1, :]            # (1, 4*LHID) = b_ih + b_hh

    # ---- DQN branch: Linear -> ReLU -> Linear -> ReLU -> Linear ----
    x = x_dqn_ref[...]
    h1 = jnp.maximum(jnp.dot(x, w1, preferred_element_type=f32) + b1, 0.0)
    h2 = jnp.maximum(jnp.dot(h1, w2, preferred_element_type=f32) + b2, 0.0)
    dqn_out = jnp.dot(h2, w3, preferred_element_type=f32) + b3        # (B, ACT_PAD)

    # ---- LSTM branch ----
    # Input projection for all timesteps at once (hoisted out of recurrence).
    x_proj = jnp.dot(x_lstm_ref[...], w_ih,
                     preferred_element_type=f32) + b_g                # (T*B, 128)

    # Lane mask selecting the g gate block (torch gate order i, f, g, o),
    # hoisted out of the loop.
    lane = lax.broadcasted_iota(jnp.int32, (B, GATES), 1)
    is_g = jnp.logical_and(lane >= 2 * LHID, lane < 3 * LHID)

    h = jnp.zeros((B, LHID), f32)
    c = jnp.zeros((B, LHID), f32)
    # Fully-unrolled recurrence (T=8 static): static slices of x_proj, one
    # 128-lane MXU push per step, activations over the whole fused vreg.
    for t in range(T):
        z = x_proj[t * B:(t + 1) * B, :] + jnp.dot(
            h, w_hh, preferred_element_type=f32)                      # (B, 128)
        act = jnp.where(is_g, jnp.tanh(z), jax.nn.sigmoid(z))
        i_g = act[:, 0 * LHID:1 * LHID]
        f_g = act[:, 1 * LHID:2 * LHID]
        g_g = act[:, 2 * LHID:3 * LHID]
        o_g = act[:, 3 * LHID:4 * LHID]
        c = f_g * c + i_g * g_g
        h = o_g * jnp.tanh(c)

    lstm_out = jnp.dot(h, w_fc, preferred_element_type=f32) + b_fc    # (B, ACT_PAD)

    # ---- ensemble: elementwise sum (cols >= ACT are exactly zero) ----
    out_ref[...] = (dqn_out + lstm_out).astype(out_ref.dtype)


def _pack_params(p):
    """Pack all parameters into two f32 buffers with 8-row-aligned blocks."""
    def pad_rows(a, rows):
        return jnp.pad(a, ((0, rows - a.shape[0]), (0, 0)))

    def pad_cols(a, cols):
        return jnp.pad(a, ((0, 0), (0, cols - a.shape[1])))

    dqn_p = jnp.concatenate([
        p["w1"],                                       # rows   0: 16
        pad_rows(p["b1"], 8),                          # rows  16: 24
        p["w2"],                                       # rows  24: 56
        pad_rows(p["b2"], 8),                          # rows  56: 64
        pad_cols(p["w3"], ACT_PAD),                    # rows  64: 96
        pad_rows(pad_cols(p["b3"], ACT_PAD), 8),       # rows  96:104
        pad_cols(p["w_fc"], ACT_PAD),                  # rows 104:136
        pad_rows(pad_cols(p["b_fc"], ACT_PAD), 8),     # rows 136:144
    ], axis=0)
    assert dqn_p.shape == (DQN_ROWS, HID)

    # Stack the 4 gates along the lane (output) dim in torch order i, f, g, o,
    # and pre-sum the two bias vectors.
    w_ih = jnp.concatenate([p["w_ih"][k] for k in range(4)], axis=1)   # (LIN, 128)
    w_hh = jnp.concatenate([p["w_hh"][k] for k in range(4)], axis=1)   # (LHID, 128)
    b_g = jnp.concatenate([p["b_ih"][k] + p["b_hh"][k]
                           for k in range(4)], axis=1)                 # (1, 128)

    lstm_p = jnp.concatenate([
        pad_rows(w_ih, LIN_PAD),   # rows  0:  8
        w_hh,                      # rows  8: 40
        pad_rows(b_g, 8),          # rows 40: 48
    ], axis=0)
    assert lstm_p.shape == (LSTM_ROWS, GATES)
    return dqn_p, lstm_p


def ensemble_forward(x_dqn, x_lstm, params):
    """x_dqn: (B, STATE); x_lstm: (B, T, LIN) batch-first (PyTorch convention)."""
    dqn_p, lstm_p = _pack_params(params)
    # time-major, flattened to (T*B, LIN), padded to LIN_PAD feature columns
    x_flat = jnp.transpose(x_lstm, (1, 0, 2)).reshape(T * B, LIN)
    x_flat = jnp.pad(x_flat, ((0, 0), (0, LIN_PAD - LIN)))

    vmem = pl.BlockSpec(memory_space=pltpu.MemorySpace.VMEM)
    out = pl.pallas_call(
        ensemble_kernel,
        out_shape=jax.ShapeDtypeStruct((B, ACT_PAD), jnp.float32),
        in_specs=[vmem] * 4,
        out_specs=vmem,
    )(x_dqn, x_flat, dqn_p, lstm_p)
    return out[:, :ACT]


def make_params(key):
    ks = jax.random.split(key, 12)
    u = lambda k, shape, s: jax.random.uniform(k, shape, jnp.float32, -s, s)
    return {
        # DQN MLP (weights stored as (in, out))
        "w1": u(ks[0], (STATE, HID), 0.25),
        "b1": u(ks[1], (1, HID), 0.25),
        "w2": u(ks[2], (HID, HID), 0.18),
        "b2": u(ks[3], (1, HID), 0.18),
        "w3": u(ks[4], (HID, ACT), 0.18),
        "b3": u(ks[5], (1, ACT), 0.18),
        # LSTM, gate-stacked in torch order (i, f, g, o)
        "w_ih": u(ks[6], (4, LIN, LHID), 0.18),
        "w_hh": u(ks[7], (4, LHID, LHID), 0.18),
        "b_ih": u(ks[8], (4, 1, LHID), 0.18),
        "b_hh": u(ks[9], (4, 1, LHID), 0.18),
        # LSTM output head
        "w_fc": u(ks[10], (LHID, ACT), 0.18),
        "b_fc": u(ks[11], (1, ACT), 0.18),
    }


def reference_forward(x_dqn, x_lstm, p):
    """Pure-JAX reference of the same forward pass (sanity check)."""
    h1 = jnp.maximum(x_dqn @ p["w1"] + p["b1"], 0.0)
    h2 = jnp.maximum(h1 @ p["w2"] + p["b2"], 0.0)
    dqn_out = h2 @ p["w3"] + p["b3"]

    h = jnp.zeros((B, LHID), jnp.float32)
    c = jnp.zeros((B, LHID), jnp.float32)
    for t in range(T):
        x_t = x_lstm[:, t, :]
        g = lambda k: (x_t @ p["w_ih"][k] + h @ p["w_hh"][k]
                       + p["b_ih"][k] + p["b_hh"][k])
        i_g = jax.nn.sigmoid(g(0))
        f_g = jax.nn.sigmoid(g(1))
        g_g = jnp.tanh(g(2))
        o_g = jax.nn.sigmoid(g(3))
        c = f_g * c + i_g * g_g
        h = o_g * jnp.tanh(c)
    lstm_out = h @ p["w_fc"] + p["b_fc"]
    return dqn_out + lstm_out


if __name__ == "__main__":
    key = jax.random.PRNGKey(0)
    k_p, k_dqn, k_lstm = jax.random.split(key, 3)

    params = make_params(k_p)
    x_dqn = jax.random.uniform(k_dqn, (B, STATE), jnp.float32, 0.0, 1.0)
    x_lstm = jax.random.uniform(k_lstm, (B, T, LIN), jnp.float32, 0.0, 1.0)

    out = jax.block_until_ready(ensemble_forward(x_dqn, x_lstm, params))
    ref = reference_forward(x_dqn, x_lstm, params)

    assert out.shape == (B, ACT) and out.dtype == jnp.float32
    assert jnp.allclose(out, ref, atol=1e-3, rtol=1e-3), (out, ref)
    print("KERNEL_OK")
</pallas_src>

<mosaic_0001>
module attributes {stable_mosaic.version = 11 : i64} {
  func.func @ensemble_kernel(%arg0: memref<8x16xf32, #tpu.memory_space<vmem>>, %arg1: memref<64x8xf32, #tpu.memory_space<vmem>>, %arg2: memref<144x32xf32, #tpu.memory_space<vmem>>, %arg3: memref<48x128xf32, #tpu.memory_space<vmem>>, %arg4: memref<8x32xf32, #tpu.memory_space<vmem>>) attributes {dimension_semantics = [], scalar_prefetch = 0 : i64, scratch_operands = 0 : i64, tpu.core_type = #tpu.core_type<tc>} {
    %c0 = arith.constant 0 : index
    %c0_0 = arith.constant 0 : index
    %0 = vector.load %arg2[%c0, %c0_0] : memref<144x32xf32, #tpu.memory_space<vmem>>, vector<16x32xf32>
    %c16 = arith.constant 16 : index
    %c0_1 = arith.constant 0 : index
    %1 = vector.load %arg2[%c16, %c0_1] : memref<144x32xf32, #tpu.memory_space<vmem>>, vector<1x32xf32>
    %c24 = arith.constant 24 : index
    %c0_2 = arith.constant 0 : index
    %2 = vector.load %arg2[%c24, %c0_2] : memref<144x32xf32, #tpu.memory_space<vmem>>, vector<32x32xf32>
    %c56 = arith.constant 56 : index
    %c0_3 = arith.constant 0 : index
    %3 = vector.load %arg2[%c56, %c0_3] : memref<144x32xf32, #tpu.memory_space<vmem>>, vector<1x32xf32>
    %c64 = arith.constant 64 : index
    %c0_4 = arith.constant 0 : index
    %4 = vector.load %arg2[%c64, %c0_4] : memref<144x32xf32, #tpu.memory_space<vmem>>, vector<32x32xf32>
    %c96 = arith.constant 96 : index
    %c0_5 = arith.constant 0 : index
    %5 = vector.load %arg2[%c96, %c0_5] : memref<144x32xf32, #tpu.memory_space<vmem>>, vector<1x32xf32>
    %c104 = arith.constant 104 : index
    %c0_6 = arith.constant 0 : index
    %6 = vector.load %arg2[%c104, %c0_6] : memref<144x32xf32, #tpu.memory_space<vmem>>, vector<32x32xf32>
    %c136 = arith.constant 136 : index
    %c0_7 = arith.constant 0 : index
    %7 = vector.load %arg2[%c136, %c0_7] : memref<144x32xf32, #tpu.memory_space<vmem>>, vector<1x32xf32>
    %c0_8 = arith.constant 0 : index
    %c0_9 = arith.constant 0 : index
    %8 = vector.load %arg3[%c0_8, %c0_9] : memref<48x128xf32, #tpu.memory_space<vmem>>, vector<8x128xf32>
    %c8 = arith.constant 8 : index
    %c0_10 = arith.constant 0 : index
    %9 = vector.load %arg3[%c8, %c0_10] : memref<48x128xf32, #tpu.memory_space<vmem>>, vector<32x128xf32>
    %c40 = arith.constant 40 : index
    %c0_11 = arith.constant 0 : index
    %10 = vector.load %arg3[%c40, %c0_11] : memref<48x128xf32, #tpu.memory_space<vmem>>, vector<1x128xf32>
    %c0_12 = arith.constant 0 : index
    %c0_13 = arith.constant 0 : index
    %11 = vector.load %arg0[%c0_12, %c0_13] : memref<8x16xf32, #tpu.memory_space<vmem>>, vector<8x16xf32>
    %cst = arith.constant dense<0.000000e+00> : vector<8x32xf32>
    %12 = tpu.matmul %11, %0, %cst {dimension_numbers = #tpu.dot_dimension_numbers<[1], [0], [0], [1], [0, 0, 1, 1], [], []>} : vector<8x16xf32>, vector<16x32xf32>, vector<8x32xf32> -> vector<8x32xf32>
    %13 = vector.broadcast %1 : vector<1x32xf32> to vector<8x32xf32>
    %14 = arith.addf %12, %13 : vector<8x32xf32>
    %cst_14 = arith.constant 0.000000e+00 : f32
    %15 = vector.broadcast %cst_14 : f32 to vector<8x32xf32>
    %16 = arith.maximumf %14, %15 : vector<8x32xf32>
    %cst_15 = arith.constant dense<0.000000e+00> : vector<8x32xf32>
    %17 = tpu.matmul %16, %2, %cst_15 {dimension_numbers = #tpu.dot_dimension_numbers<[1], [0], [0], [1], [0, 0, 1, 1], [], []>} : vector<8x32xf32>, vector<32x32xf32>, vector<8x32xf32> -> vector<8x32xf32>
    %18 = vector.broadcast %3 : vector<1x32xf32> to vector<8x32xf32>
    %19 = arith.addf %17, %18 : vector<8x32xf32>
    %cst_16 = arith.constant 0.000000e+00 : f32
    %20 = vector.broadcast %cst_16 : f32 to vector<8x32xf32>
    %21 = arith.maximumf %19, %20 : vector<8x32xf32>
    %cst_17 = arith.constant dense<0.000000e+00> : vector<8x32xf32>
    %22 = tpu.matmul %21, %4, %cst_17 {dimension_numbers = #tpu.dot_dimension_numbers<[1], [0], [0], [1], [0, 0, 1, 1], [], []>} : vector<8x32xf32>, vector<32x32xf32>, vector<8x32xf32> -> vector<8x32xf32>
    %23 = vector.broadcast %5 : vector<1x32xf32> to vector<8x32xf32>
    %24 = arith.addf %22, %23 : vector<8x32xf32>
    %c0_18 = arith.constant 0 : index
    %c0_19 = arith.constant 0 : index
    %25 = vector.load %arg1[%c0_18, %c0_19] : memref<64x8xf32, #tpu.memory_space<vmem>>, vector<64x8xf32>
    %cst_20 = arith.constant dense<0.000000e+00> : vector<64x128xf32>
    %26 = tpu.matmul %25, %8, %cst_20 {dimension_numbers = #tpu.dot_dimension_numbers<[1], [0], [0], [1], [0, 0, 1, 1], [], []>} : vector<64x8xf32>, vector<8x128xf32>, vector<64x128xf32> -> vector<64x128xf32>
    %27 = vector.broadcast %10 : vector<1x128xf32> to vector<64x128xf32>
    %28 = arith.addf %26, %27 : vector<64x128xf32>
    %29 = tpu.iota {dimensions = array<i32: 1>} : vector<8x128xi32>
    %c64_i32 = arith.constant 64 : i32
    %30 = vector.broadcast %c64_i32 : i32 to vector<8x128xi32>
    %31 = arith.cmpi sge, %29, %30 : vector<8x128xi32>
    %c96_i32 = arith.constant 96 : i32
    %32 = vector.broadcast %c96_i32 : i32 to vector<8x128xi32>
    %33 = arith.cmpi slt, %29, %32 : vector<8x128xi32>
    %34 = arith.andi %31, %33 : vector<8x128xi1>
    %cst_21 = arith.constant 0.000000e+00 : f32
    %35 = vector.broadcast %cst_21 : f32 to vector<8x32xf32>
    %cst_22 = arith.constant 0.000000e+00 : f32
    %36 = vector.broadcast %cst_22 : f32 to vector<8x32xf32>
    %37 = vector.extract_strided_slice %28 {offsets = [0, 0], sizes = [8, 128], strides = [1, 1]} : vector<64x128xf32> to vector<8x128xf32>
    %cst_23 = arith.constant dense<0.000000e+00> : vector<8x128xf32>
    %38 = tpu.matmul %35, %9, %cst_23 {dimension_numbers = #tpu.dot_dimension_numbers<[1], [0], [0], [1], [0, 0, 1, 1], [], []>} : vector<8x32xf32>, vector<32x128xf32>, vector<8x128xf32> -> vector<8x128xf32>
    %39 = arith.addf %37, %38 : vector<8x128xf32>
    %40 = math.tanh %39 : vector<8x128xf32>
    %41 = arith.negf %39 : vector<8x128xf32>
    %42 = math.exp %41 : vector<8x128xf32>
    %cst_24 = arith.constant 1.000000e+00 : f32
    %43 = vector.broadcast %cst_24 : f32 to vector<8x128xf32>
    %44 = arith.addf %43, %42 : vector<8x128xf32>
    %45 = arith.divf %43, %44 : vector<8x128xf32>
    %46 = arith.select %34, %40, %45 : vector<8x128xi1>, vector<8x128xf32>
    %47 = vector.extract_strided_slice %46 {offsets = [0, 0], sizes = [8, 32], strides = [1, 1]} : vector<8x128xf32> to vector<8x32xf32>
    %48 = vector.extract_strided_slice %46 {offsets = [0, 32], sizes = [8, 32], strides = [1, 1]} : vector<8x128xf32> to vector<8x32xf32>
    %49 = vector.extract_strided_slice %46 {offsets = [0, 64], sizes = [8, 32], strides = [1, 1]} : vector<8x128xf32> to vector<8x32xf32>
    %50 = vector.extract_strided_slice %46 {offsets = [0, 96], sizes = [8, 32], strides = [1, 1]} : vector<8x128xf32> to vector<8x32xf32>
    %51 = arith.mulf %48, %36 : vector<8x32xf32>
    %52 = arith.mulf %47, %49 : vector<8x32xf32>
    %53 = arith.addf %51, %52 : vector<8x32xf32>
    %54 = math.tanh %53 : vector<8x32xf32>
    %55 = arith.mulf %50, %54 : vector<8x32xf32>
    %56 = vector.extract_strided_slice %28 {offsets = [8, 0], sizes = [8, 128], strides = [1, 1]} : vector<64x128xf32> to vector<8x128xf32>
    %cst_25 = arith.constant dense<0.000000e+00> : vector<8x128xf32>
    %57 = tpu.matmul %55, %9, %cst_25 {dimension_numbers = #tpu.dot_dimension_numbers<[1], [0], [0], [1], [0, 0, 1, 1], [], []>} : vector<8x32xf32>, vector<32x128xf32>, vector<8x128xf32> -> vector<8x128xf32>
    %58 = arith.addf %56, %57 : vector<8x128xf32>
    %59 = math.tanh %58 : vector<8x128xf32>
    %60 = arith.negf %58 : vector<8x128xf32>
    %61 = math.exp %60 : vector<8x128xf32>
    %cst_26 = arith.constant 1.000000e+00 : f32
    %62 = vector.broadcast %cst_26 : f32 to vector<8x128xf32>
    %63 = arith.addf %62, %61 : vector<8x128xf32>
    %64 = arith.divf %62, %63 : vector<8x128xf32>
    %65 = arith.select %34, %59, %64 : vector<8x128xi1>, vector<8x128xf32>
    %66 = vector.extract_strided_slice %65 {offsets = [0, 0], sizes = [8, 32], strides = [1, 1]} : vector<8x128xf32> to vector<8x32xf32>
    %67 = vector.extract_strided_slice %65 {offsets = [0, 32], sizes = [8, 32], strides = [1, 1]} : vector<8x128xf32> to vector<8x32xf32>
    %68 = vector.extract_strided_slice %65 {offsets = [0, 64], sizes = [8, 32], strides = [1, 1]} : vector<8x128xf32> to vector<8x32xf32>
    %69 = vector.extract_strided_slice %65 {offsets = [0, 96], sizes = [8, 32], strides = [1, 1]} : vector<8x128xf32> to vector<8x32xf32>
    %70 = arith.mulf %67, %53 : vector<8x32xf32>
    %71 = arith.mulf %66, %68 : vector<8x32xf32>
    %72 = arith.addf %70, %71 : vector<8x32xf32>
    %73 = math.tanh %72 : vector<8x32xf32>
    %74 = arith.mulf %69, %73 : vector<8x32xf32>
    %75 = vector.extract_strided_slice %28 {offsets = [16, 0], sizes = [8, 128], strides = [1, 1]} : vector<64x128xf32> to vector<8x128xf32>
    %cst_27 = arith.constant dense<0.000000e+00> : vector<8x128xf32>
    %76 = tpu.matmul %74, %9, %cst_27 {dimension_numbers = #tpu.dot_dimension_numbers<[1], [0], [0], [1], [0, 0, 1, 1], [], []>} : vector<8x32xf32>, vector<32x128xf32>, vector<8x128xf32> -> vector<8x128xf32>
    %77 = arith.addf %75, %76 : vector<8x128xf32>
    %78 = math.tanh %77 : vector<8x128xf32>
    %79 = arith.negf %77 : vector<8x128xf32>
    %80 = math.exp %79 : vector<8x128xf32>
    %cst_28 = arith.constant 1.000000e+00 : f32
    %81 = vector.broadcast %cst_28 : f32 to vector<8x128xf32>
    %82 = arith.addf %81, %80 : vector<8x128xf32>
    %83 = arith.divf %81, %82 : vector<8x128xf32>
    %84 = arith.select %34, %78, %83 : vector<8x128xi1>, vector<8x128xf32>
    %85 = vector.extract_strided_slice %84 {offsets = [0, 0], sizes = [8, 32], strides = [1, 1]} : vector<8x128xf32> to vector<8x32xf32>
    %86 = vector.extract_strided_slice %84 {offsets = [0, 32], sizes = [8, 32], strides = [1, 1]} : vector<8x128xf32> to vector<8x32xf32>
    %87 = vector.extract_strided_slice %84 {offsets = [0, 64], sizes = [8, 32], strides = [1, 1]} : vector<8x128xf32> to vector<8x32xf32>
    %88 = vector.extract_strided_slice %84 {offsets = [0, 96], sizes = [8, 32], strides = [1, 1]} : vector<8x128xf32> to vector<8x32xf32>
    %89 = arith.mulf %86, %72 : vector<8x32xf32>
    %90 = arith.mulf %85, %87 : vector<8x32xf32>
    %91 = arith.addf %89, %90 : vector<8x32xf32>
    %92 = math.tanh %91 : vector<8x32xf32>
    %93 = arith.mulf %88, %92 : vector<8x32xf32>
    %94 = vector.extract_strided_slice %28 {offsets = [24, 0], sizes = [8, 128], strides = [1, 1]} : vector<64x128xf32> to vector<8x128xf32>
    %cst_29 = arith.constant dense<0.000000e+00> : vector<8x128xf32>
    %95 = tpu.matmul %93, %9, %cst_29 {dimension_numbers = #tpu.dot_dimension_numbers<[1], [0], [0], [1], [0, 0, 1, 1], [], []>} : vector<8x32xf32>, vector<32x128xf32>, vector<8x128xf32> -> vector<8x128xf32>
    %96 = arith.addf %94, %95 : vector<8x128xf32>
    %97 = math.tanh %96 : vector<8x128xf32>
    %98 = arith.negf %96 : vector<8x128xf32>
    %99 = math.exp %98 : vector<8x128xf32>
    %cst_30 = arith.constant 1.000000e+00 : f32
    %100 = vector.broadcast %cst_30 : f32 to vector<8x128xf32>
    %101 = arith.addf %100, %99 : vector<8x128xf32>
    %102 = arith.divf %100, %101 : vector<8x128xf32>
    %103 = arith.select %34, %97, %102 : vector<8x128xi1>, vector<8x128xf32>
    %104 = vector.extract_strided_slice %103 {offsets = [0, 0], sizes = [8, 32], strides = [1, 1]} : vector<8x128xf32> to vector<8x32xf32>
    %105 = vector.extract_strided_slice %103 {offsets = [0, 32], sizes = [8, 32], strides = [1, 1]} : vector<8x128xf32> to vector<8x32xf32>
    %106 = vector.extract_strided_slice %103 {offsets = [0, 64], sizes = [8, 32], strides = [1, 1]} : vector<8x128xf32> to vector<8x32xf32>
    %107 = vector.extract_strided_slice %103 {offsets = [0, 96], sizes = [8, 32], strides = [1, 1]} : vector<8x128xf32> to vector<8x32xf32>
    %108 = arith.mulf %105, %91 : vector<8x32xf32>
    %109 = arith.mulf %104, %106 : vector<8x32xf32>
    %110 = arith.addf %108, %109 : vector<8x32xf32>
    %111 = math.tanh %110 : vector<8x32xf32>
    %112 = arith.mulf %107, %111 : vector<8x32xf32>
    %113 = vector.extract_strided_slice %28 {offsets = [32, 0], sizes = [8, 128], strides = [1, 1]} : vector<64x128xf32> to vector<8x128xf32>
    %cst_31 = arith.constant dense<0.000000e+00> : vector<8x128xf32>
    %114 = tpu.matmul %112, %9, %cst_31 {dimension_numbers = #tpu.dot_dimension_numbers<[1], [0], [0], [1], [0, 0, 1, 1], [], []>} : vector<8x32xf32>, vector<32x128xf32>, vector<8x128xf32> -> vector<8x128xf32>
    %115 = arith.addf %113, %114 : vector<8x128xf32>
    %116 = math.tanh %115 : vector<8x128xf32>
    %117 = arith.negf %115 : vector<8x128xf32>
    %118 = math.exp %117 : vector<8x128xf32>
    %cst_32 = arith.constant 1.000000e+00 : f32
    %119 = vector.broadcast %cst_32 : f32 to vector<8x128xf32>
    %120 = arith.addf %119, %118 : vector<8x128xf32>
    %121 = arith.divf %119, %120 : vector<8x128xf32>
    %122 = arith.select %34, %116, %121 : vector<8x128xi1>, vector<8x128xf32>
    %123 = vector.extract_strided_slice %122 {offsets = [0, 0], sizes = [8, 32], strides = [1, 1]} : vector<8x128xf32> to vector<8x32xf32>
    %124 = vector.extract_strided_slice %122 {offsets = [0, 32], sizes = [8, 32], strides = [1, 1]} : vector<8x128xf32> to vector<8x32xf32>
    %125 = vector.extract_strided_slice %122 {offsets = [0, 64], sizes = [8, 32], strides = [1, 1]} : vector<8x128xf32> to vector<8x32xf32>
    %126 = vector.extract_strided_slice %122 {offsets = [0, 96], sizes = [8, 32], strides = [1, 1]} : vector<8x128xf32> to vector<8x32xf32>
    %127 = arith.mulf %124, %110 : vector<8x32xf32>
    %128 = arith.mulf %123, %125 : vector<8x32xf32>
    %129 = arith.addf %127, %128 : vector<8x32xf32>
    %130 = math.tanh %129 : vector<8x32xf32>
    %131 = arith.mulf %126, %130 : vector<8x32xf32>
    %132 = vector.extract_strided_slice %28 {offsets = [40, 0], sizes = [8, 128], strides = [1, 1]} : vector<64x128xf32> to vector<8x128xf32>
    %cst_33 = arith.constant dense<0.000000e+00> : vector<8x128xf32>
    %133 = tpu.matmul %131, %9, %cst_33 {dimension_numbers = #tpu.dot_dimension_numbers<[1], [0], [0], [1], [0, 0, 1, 1], [], []>} : vector<8x32xf32>, vector<32x128xf32>, vector<8x128xf32> -> vector<8x128xf32>
    %134 = arith.addf %132, %133 : vector<8x128xf32>
    %135 = math.tanh %134 : vector<8x128xf32>
    %136 = arith.negf %134 : vector<8x128xf32>
    %137 = math.exp %136 : vector<8x128xf32>
    %cst_34 = arith.constant 1.000000e+00 : f32
    %138 = vector.broadcast %cst_34 : f32 to vector<8x128xf32>
    %139 = arith.addf %138, %137 : vector<8x128xf32>
    %140 = arith.divf %138, %139 : vector<8x128xf32>
    %141 = arith.select %34, %135, %140 : vector<8x128xi1>, vector<8x128xf32>
    %142 = vector.extract_strided_slice %141 {offsets = [0, 0], sizes = [8, 32], strides = [1, 1]} : vector<8x128xf32> to vector<8x32xf32>
    %143 = vector.extract_strided_slice %141 {offsets = [0, 32], sizes = [8, 32], strides = [1, 1]} : vector<8x128xf32> to vector<8x32xf32>
    %144 = vector.extract_strided_slice %141 {offsets = [0, 64], sizes = [8, 32], strides = [1, 1]} : vector<8x128xf32> to vector<8x32xf32>
    %145 = vector.extract_strided_slice %141 {offsets = [0, 96], sizes = [8, 32], strides = [1, 1]} : vector<8x128xf32> to vector<8x32xf32>
    %146 = arith.mulf %143, %129 : vector<8x32xf32>
    %147 = arith.mulf %142, %144 : vector<8x32xf32>
    %148 = arith.addf %146, %147 : vector<8x32xf32>
    %149 = math.tanh %148 : vector<8x32xf32>
    %150 = arith.mulf %145, %149 : vector<8x32xf32>
    %151 = vector.extract_strided_slice %28 {offsets = [48, 0], sizes = [8, 128], strides = [1, 1]} : vector<64x128xf32> to vector<8x128xf32>
    %cst_35 = arith.constant dense<0.000000e+00> : vector<8x128xf32>
    %152 = tpu.matmul %150, %9, %cst_35 {dimension_numbers = #tpu.dot_dimension_numbers<[1], [0], [0], [1], [0, 0, 1, 1], [], []>} : vector<8x32xf32>, vector<32x128xf32>, vector<8x128xf32> -> vector<8x128xf32>
    %153 = arith.addf %151, %152 : vector<8x128xf32>
    %154 = math.tanh %153 : vector<8x128xf32>
    %155 = arith.negf %153 : vector<8x128xf32>
    %156 = math.exp %155 : vector<8x128xf32>
    %cst_36 = arith.constant 1.000000e+00 : f32
    %157 = vector.broadcast %cst_36 : f32 to vector<8x128xf32>
    %158 = arith.addf %157, %156 : vector<8x128xf32>
    %159 = arith.divf %157, %158 : vector<8x128xf32>
    %160 = arith.select %34, %154, %159 : vector<8x128xi1>, vector<8x128xf32>
    %161 = vector.extract_strided_slice %160 {offsets = [0, 0], sizes = [8, 32], strides = [1, 1]} : vector<8x128xf32> to vector<8x32xf32>
    %162 = vector.extract_strided_slice %160 {offsets = [0, 32], sizes = [8, 32], strides = [1, 1]} : vector<8x128xf32> to vector<8x32xf32>
    %163 = vector.extract_strided_slice %160 {offsets = [0, 64], sizes = [8, 32], strides = [1, 1]} : vector<8x128xf32> to vector<8x32xf32>
    %164 = vector.extract_strided_slice %160 {offsets = [0, 96], sizes = [8, 32], strides = [1, 1]} : vector<8x128xf32> to vector<8x32xf32>
    %165 = arith.mulf %162, %148 : vector<8x32xf32>
    %166 = arith.mulf %161, %163 : vector<8x32xf32>
    %167 = arith.addf %165, %166 : vector<8x32xf32>
    %168 = math.tanh %167 : vector<8x32xf32>
    %169 = arith.mulf %164, %168 : vector<8x32xf32>
    %170 = vector.extract_strided_slice %28 {offsets = [56, 0], sizes = [8, 128], strides = [1, 1]} : vector<64x128xf32> to vector<8x128xf32>
    %cst_37 = arith.constant dense<0.000000e+00> : vector<8x128xf32>
    %171 = tpu.matmul %169, %9, %cst_37 {dimension_numbers = #tpu.dot_dimension_numbers<[1], [0], [0], [1], [0, 0, 1, 1], [], []>} : vector<8x32xf32>, vector<32x128xf32>, vector<8x128xf32> -> vector<8x128xf32>
    %172 = arith.addf %170, %171 : vector<8x128xf32>
    %173 = math.tanh %172 : vector<8x128xf32>
    %174 = arith.negf %172 : vector<8x128xf32>
    %175 = math.exp %174 : vector<8x128xf32>
    %cst_38 = arith.constant 1.000000e+00 : f32
    %176 = vector.broadcast %cst_38 : f32 to vector<8x128xf32>
    %177 = arith.addf %176, %175 : vector<8x128xf32>
    %178 = arith.divf %176, %177 : vector<8x128xf32>
    %179 = arith.select %34, %173, %178 : vector<8x128xi1>, vector<8x128xf32>
    %180 = vector.extract_strided_slice %179 {offsets = [0, 0], sizes = [8, 32], strides = [1, 1]} : vector<8x128xf32> to vector<8x32xf32>
    %181 = vector.extract_strided_slice %179 {offsets = [0, 32], sizes = [8, 32], strides = [1, 1]} : vector<8x128xf32> to vector<8x32xf32>
    %182 = vector.extract_strided_slice %179 {offsets = [0, 64], sizes = [8, 32], strides = [1, 1]} : vector<8x128xf32> to vector<8x32xf32>
    %183 = vector.extract_strided_slice %179 {offsets = [0, 96], sizes = [8, 32], strides = [1, 1]} : vector<8x128xf32> to vector<8x32xf32>
    %184 = arith.mulf %181, %167 : vector<8x32xf32>
    %185 = arith.mulf %180, %182 : vector<8x32xf32>
    %186 = arith.addf %184, %185 : vector<8x32xf32>
    %187 = math.tanh %186 : vector<8x32xf32>
    %188 = arith.mulf %183, %187 : vector<8x32xf32>
    %cst_39 = arith.constant dense<0.000000e+00> : vector<8x32xf32>
    %189 = tpu.matmul %188, %6, %cst_39 {dimension_numbers = #tpu.dot_dimension_numbers<[1], [0], [0], [1], [0, 0, 1, 1], [], []>} : vector<8x32xf32>, vector<32x32xf32>, vector<8x32xf32> -> vector<8x32xf32>
    %190 = vector.broadcast %7 : vector<1x32xf32> to vector<8x32xf32>
    %191 = arith.addf %189, %190 : vector<8x32xf32>
    %192 = arith.addf %24, %191 : vector<8x32xf32>
    %c0_40 = arith.constant 0 : index
    %c0_41 = arith.constant 0 : index
    %193 = vector.load %arg4[%c0_40, %c0_41] : memref<8x32xf32, #tpu.memory_space<vmem>>, vector<8x32xf32>
    tpu.vector_store %arg4[%c0_40, %c0_41], %192 {strides = array<i32>} : memref<8x32xf32, #tpu.memory_space<vmem>>, vector<8x32xf32>,
    return
  }
}

</mosaic_0001>

<bundles_post_ra>
// kernel: tpu_custom_call.1
= control target key start
LH: loop header
LB: loop body
LE: loop exit
PB: predicated region body
PF: predicated region fallthrough
CT: control target
= control target key end

     0   :  { %vm128_vm0 = vcmask 64512   ;;  %s1142_s0 = inlined_call_operand.vmem [shape: f32[8,16], index: 0, kind: input, shape index: {}]   ;;  %s1143_s1 = inlined_call_operand.vmem [shape: f32[64,8], index: 1, kind: input, shape index: {}]   ;;  %s1144_s2 = inlined_call_operand.vmem [shape: f32[144,32], index: 2, kind: input, shape index: {}]   ;;  %s1145_s3 = inlined_call_operand.vmem [shape: f32[48,128], index: 3, kind: input, shape index: {}]   ;;  %s1146_s4 = inlined_call_operand.hbm [shape: f32[8,32], index: 4, kind: output, shape index: {}]  }
   0x1   :  { %v36_v0 = vld [vmem:[%s1145_s3] sm:$0xff]  ;;  %v924_v3 = vld [vmem:[%s1145_s3 + $0x18] sm:$0xff]  ;;  %v930_v4 = vld [vmem:[%s1145_s3 + $0x10] sm:$0xff] }
   0x2   :  { %v119_v1 = vld [vmem:[%s1143_s1] sm:$0xff]  ;;  %168 = vmatpush.msra.mxu0 %v36_v0  ;;  %780 = vmatpush.msra.mxu3 %v36_v0 }
   0x3   :  { %v918_v2 = vld [vmem:[%s1145_s3 + $0x20] sm:$0xff]  ;;  %756 = vmatmul.msk.f32.vlgmr.msra.gmra.mxu0 %vm128_vm0, %v119_v1 }
   0x4   :  { %214 = vmatpush.msrb.mxu0 %v918_v2 }
   0x5   :  { %9 = vsyncpa [#allocation3], 0  ;;  %v936_v5 = vld [vmem:[%s1145_s3 + $0x8] sm:$0xff]  ;;  %v880_v7 = vmov 0.0   ;;  %v194_v17 = vlaneseq  ;;  %s882_s5 = smov 32   ;;  %v18_v35 = vld [vmem:[%s1144_s2] sm:$0xff] }
   0x6   :  { %215 = vmatpush.msrb.mxu0 %v924_v3  ;;  %v120_v6 = vld [vmem:[%s1143_s1 + $0x8] sm:$0xff]  ;;  %v42_v36 = vld [vmem:[%s1142_s0] sm:$0xff]  ;;  %vm44_vm8 = vcmask 130048   ;;  %v24_v41 = vld [vmem:[%s1144_s2 + $0x30] sm:$0xff]  ;;  %vm70_vm9 = vcmask 261120   ;;  %s883_s27 = smov [#allocation2]  }
   0x7   :  { %v957_v10 = vld [vmem:[%s1145_s3 + $0x28] ss:$0 sm:$0xff]  ;;  %v195_v19 = vand.u32 127, %v194_v17  ;;  %s881_s3 = smov 64   ;;  %v22_v43 = vld [vmem:[%s1144_s2 + $0x20] sm:$0xff]  ;;  %v21_v44 = vld [vmem:[%s1144_s2 + $0x18] sm:$0xff] }
   0x8   :  { %216 = vmatpush.msrb.mxu0 %v930_v4  ;;  %v19_v34 = vld [vmem:[%s1144_s2 + $0x8] sm:$0xff]  ;;  %v786_v45 = vld [vmem:[%s1144_s2 + $0x10] ss:$0 sm:$0xff]  ;;  %v29_v51 = vld [vmem:[%s1144_s2 + $0x58] sm:$0xff]  ;;  %s742_s28 = sshll.u32 %s883_s27, 4  ;;  %s744_s6 = sshll.u32 %s1146_s4, 4  ;;  %s743_s28 = int_to_ptr.vmem [resolvable:$true] %s742_s28  ;;  %s745_s6 = int_to_ptr.hbm [resolvable:$true] %s744_s6 }
   0x9   :  { %vm196_vm1 = vcmp.ge.s32.totalorder %v195_v19, 64  ;;  %vm197_vm2 = vcmp.lt.s32.totalorder %v195_v19, 96  ;;  %62 = vmatpush.msra.mxu1 %v19_v34  ;;  %v23_v42 = vld [vmem:[%s1144_s2 + $0x28] sm:$0xff]  ;;  %v28_v52 = vld [vmem:[%s1144_s2 + $0x50] sm:$0xff]  ;;  %111 = vmatpush.msra.mxu2 %v29_v51  ;;  %v26_v54 = vld [vmem:[%s1144_s2 + $0x40] sm:$0xff] }
   0xa   :  { %217 = vmatpush.msrb.mxu0 %v936_v5  ;;  %vm960_vm4 = vmand %vm196_vm1, %vm197_vm2  ;;  %v27_v53 = vld [vmem:[%s1144_s2 + $0x48] sm:$0xff]  ;;  %v787_v55 = vld [vmem:[%s1144_s2 + $0x38] ss:$0 sm:$0xff] }
   0xb   :  { %757 = vmatmul.msk.f32.gmra.mxu0 %vm128_vm0, %v120_v6  ;;  %63 = vmatpush.msra.mxu1 %v18_v35  ;;  %v33_v25 = vld [vmem:[%s1144_s2 + $0x78] sm:$0xff] }
   0xc   :  { %406 = vmatpush.msra.mxu0 %v918_v2  ;;  %753 = vmatmul.msk.f32.vlgmr.msra.gmra.mxu1 %vm44_vm8, %v42_v36 }
   0xd   :  { %86 = vmatpush.msrb.mxu1 %v24_v41  ;;  %112 = vmatpush.msra.mxu2 %v28_v52  ;;  %v122_v52 = vld [vmem:[%s1143_s1 + $0x18] sm:$0xff] }
   0xe   :  { %407 = vmatpush.msra.mxu0 %v924_v3 }
   0xf   :  { %87 = vmatpush.msrb.mxu1 %v23_v42  ;;  %113 = vmatpush.msra.mxu2 %v27_v53 }
  0x10   :  { %408 = vmatpush.msra.mxu0 %v930_v4 }
  0x11   :  { %88 = vmatpush.msrb.mxu1 %v22_v43  ;;  %114 = vmatpush.msra.mxu2 %v26_v54 }
  0x12   :  { %409 = vmatpush.msra.mxu0 %v936_v5 }
  0x13   :  { %218 = vmatmul.f32.vlgmr.msrb.gmra.mxu0 %v880_v7  ;;  %89 = vmatpush.msrb.mxu1 %v21_v44 }
  0x14   :  { %598 = vmatpush.msrb.mxu0 %v918_v2  ;;  %342 = vmatpush.msrb.mxu2 %v918_v2 }
  0x15   :  { %278 = vmatpush.msra.mxu1 %v918_v2 }
  0x16   :  { %599 = vmatpush.msrb.mxu0 %v924_v3  ;;  %343 = vmatpush.msrb.mxu2 %v924_v3 }
  0x17   :  { %279 = vmatpush.msra.mxu1 %v924_v3 }
  0x18   :  { %600 = vmatpush.msrb.mxu0 %v930_v4  ;;  %344 = vmatpush.msrb.mxu2 %v930_v4 }
  0x19   :  { %280 = vmatpush.msra.mxu1 %v930_v4 }
  0x1a   :  { %601 = vmatpush.msrb.mxu0 %v936_v5  ;;  %345 = vmatpush.msrb.mxu2 %v936_v5 }
  0x1b   :  { %281 = vmatpush.msra.mxu1 %v936_v5 }
  0x80   :  { %v170_v8 = vpop.f32.mrf.mxu0 }
  0x81   :  { %v171_v11 = vadd.f32 %v957_v10, %v170_v8 }
  0x88   :  { %v952_v9 = vpop.f32.mrf.mxu0 }
  0x89   :  { %v65_v46 = vpop.f32.mrf.mxu1  ;;  %v174_v60 = vadd.f32 %v957_v10, %v952_v9 }
  0x8a   :  { %v66_v47 = vadd.f32 %v786_v45, %v65_v46 }
  0x8c   :  { %v68_v48 = vmax.f32 %v66_v47, 0.0 }
  0x8e   :  { %754 = vmatmul.msk.f32.vlgmr.msrb.gmra.mxu1 %vm70_vm9, %v68_v48 }
  0x8f   :  { %470 = vmatpush.msrb.mxu1 %v918_v2 }
  0x90   :  { %v219_v12 = vpop.f32.mrf.mxu0 }
  0x91   :  { %v222_v13 = vadd.f32 %v219_v12, %v171_v11  ;;  %471 = vmatpush.msrb.mxu1 %v924_v3 }
  0x93   :  { %v764_v14 = vmul.f32 -1.442695, %v222_v13  ;;  %472 = vmatpush.msrb.mxu1 %v930_v4 }
  0x95   :  { %790 = vpow2.f32 %v764_v14  ;;  %473 = vmatpush.msrb.mxu1 %v936_v5 }
  0x9b   :  { %v791_v15 = vpop.eup %790 }
  0x9c   :  { %v227_v16 = vadd.f32 1.0, %v791_v15 }
  0x9e   :  { %792 = vrcp.f32 %v227_v16  ;;  %v239_v22 = vand.u32 2147483648, %v227_v16  ;;  %v237_v24 = vand.u32 2147483647, %v227_v16  ;;  %vm233_vm5 = vweird.f32 %v227_v16 }
  0x9f   :  { %794 = vtanh.f32 %v222_v13 }
  0xa0   :  { %v240_v27 = vor.u32 1.1754944e-38, %v239_v22  ;;  %vm238_vm7 = vcmp.eq.f32.partialorder %v237_v24, 8.507059e+37 }
  0xa4   :  { %v793_v18 = vpop.eup %792 }
  0xa5   :  { %v229_v20 = vmul.f32 %v793_v18, %v227_v16  ;;  %vm234_vm3 = vweird.f32 %v793_v18  ;;  %v795_v29 = vpop.eup %794 }
  0xa6   :  { %vm235_vm6 = vmor %vm233_vm5, %vm234_vm3 }
  0xa7   :  { %v230_v21 = vsub.f32 1.0, %v229_v20 }
  0xa9   :  { %v231_v23 = vmul.f32 %v793_v18, %v230_v21  ;;  %v121_v21 = vld [vmem:[%s1143_s1 + $0x10] sm:$0xff] }
  0xaa   :  { %758 = vmatmul.msk.f32.vlgmr.msra.gmra.mxu3 %vm128_vm0, %v121_v21 }
  0xab   :  { %v232_v26 = vadd.f32 %v793_v18, %v231_v23 }
  0xad   :  { %v236_v28 = vsel %vm235_vm6, %v793_v18, %v232_v26 }
  0xae   :  { %v241_v30 = vsel %vm238_vm7, %v240_v27, %v236_v28 }
  0xaf   :  { %v243_v31 = vsel %vm960_vm4, %v795_v29, %v241_v30 }
  0xb0   :  { %246 = vrot.lane.b32.xlu0 %v243_v31, %s881_s3  ;;  %v244_v37 = vmul.f32 0.0, %v243_v31 }
  0xb2   :  { %759 = vmatmul.msk.f32.gmra.mxu3 %vm128_vm0, %v122_v52 }
 0x10b   :  { %v91_v56 = vpop.f32.mrf.mxu1 }
 0x10c   :  { %v92_v57 = vadd.f32 %v787_v55, %v91_v56 }
 0x10e   :  { %v94_v58 = vmax.f32 %v92_v57, 0.0 }
 0x110   :  { %755 = vmatmul.msk.f32.vlgmr.msra.gmra.mxu2 %vm70_vm9, %v94_v58 }
 0x111   :  { %534 = vmatpush.msra.mxu2 %v918_v2 }
 0x113   :  { %535 = vmatpush.msra.mxu2 %v924_v3 }
 0x115   :  { %536 = vmatpush.msra.mxu2 %v930_v4 }
 0x117   :  { %537 = vmatpush.msra.mxu2 %v936_v5 }
 0x122   :  { %v247_v32 = vpop.permute.xlu0 %246 }
 0x123   :  { %v249_v33 = vmul.f32 %v247_v32, %v243_v31 }
 0x125   :  { %251 = vrot.lane.b32.xlu0 %v249_v33, %s882_s5 }
 0x12d   :  { %v176_v27 = vpop.f32.mrf.mxu3 }
 0x12e   :  { %v177_v28 = vadd.f32 %v957_v10, %v176_v27 }
 0x135   :  { %v179_v56 = vpop.f32.mrf.mxu3 }
 0x136   :  { %v180_v57 = vadd.f32 %v957_v10, %v179_v56 }
 0x193   :  { %v1049_v26 = vpop.f32.mrf.mxu2 }
 0x197   :  { %v252_v38 = vpop.permute.xlu0 %251 }
 0x198   :  { %v977_v39 = vadd.f32 %v252_v38, %v244_v37 }
 0x19a   :  { %796 = vtanh.f32 %v977_v39 }
 0x1a0   :  { %v797_v40 = vpop.eup %796 }
 0x1a1   :  { %257 = vrot.lane.b32.xlu1 %v797_v40, %s881_s3 }
 0x213   :  { %v258_v49 = vpop.permute.xlu1 %257 }
 0x214   :  { %v260_v50 = vmul.f32 %v258_v49, %v243_v31 }
 0x216   :  { %262 = vrot.lane.b32.xlu1 %v260_v50, %s882_s5 }
 0x288   :  { %v263_v59 = vpop.permute.xlu1 %262 }
 0x289   :  { %765 = vmatmul.msk.f32.vlgmr.msra.gmra.mxu1 %vm70_vm9, %v263_v59 }
 0x28a   :  { %662 = vmatpush.msra.mxu1 %v918_v2 }
 0x28c   :  { %663 = vmatpush.msra.mxu1 %v924_v3 }
 0x28e   :  { %664 = vmatpush.msra.mxu1 %v930_v4 }
 0x290   :  { %665 = vmatpush.msra.mxu1 %v936_v5 }
 0x306   :  { %v283_v61 = vpop.f32.mrf.mxu1 }
 0x307   :  { %v286_v62 = vadd.f32 %v283_v61, %v174_v60 }
 0x309   :  { %v766_v63 = vmul.f32 -1.442695, %v286_v62 }
 0x30b   :  { %798 = vpow2.f32 %v766_v63 }
 0x311   :  { %v799_v0 = vpop.eup %798 }
 0x312   :  { %v291_v1 = vadd.f32 1.0, %v799_v0 }
 0x314   :  { %800 = vrcp.f32 %v291_v1  ;;  %v303_v7 = vand.u32 2147483648, %v291_v1  ;;  %v301_v8 = vand.u32 2147483647, %v291_v1  ;;  %vm297_vm11 = vweird.f32 %v291_v1 }
 0x315   :  { %802 = vtanh.f32 %v286_v62 }
 0x316   :  { %v304_v5 = vor.u32 1.1754944e-38, %v303_v7  ;;  %vm302_vm13 = vcmp.eq.f32.partialorder %v301_v8, 8.507059e+37 }
 0x31a   :  { %v801_v2 = vpop.eup %800 }
 0x31b   :  { %v293_v3 = vmul.f32 %v801_v2, %v291_v1  ;;  %vm298_vm10 = vweird.f32 %v801_v2  ;;  %v803_v12 = vpop.eup %802 }
 0x31c   :  { %vm299_vm12 = vmor %vm297_vm11, %vm298_vm10 }
 0x31d   :  { %v294_v6 = vsub.f32 1.0, %v293_v3 }
 0x31f   :  { %v295_v4 = vmul.f32 %v801_v2, %v294_v6 }
 0x321   :  { %v296_v11 = vadd.f32 %v801_v2, %v295_v4 }
 0x323   :  { %v300_v9 = vsel %vm299_vm12, %v801_v2, %v296_v11 }
 0x324   :  { %v305_v13 = vsel %vm302_vm13, %v304_v5, %v300_v9 }
 0x325   :  { %v307_v14 = vsel %vm960_vm4, %v803_v12, %v305_v13 }
 0x326   :  { %310 = vrot.lane.b32.xlu2 %v307_v14, %s881_s3  ;;  %v308_v17 = vmul.f32 %v307_v14, %v977_v39 }
 0x380   :  { %v311_v15 = vpop.permute.xlu2 %310 }
 0x381   :  { %v313_v16 = vmul.f32 %v311_v15, %v307_v14 }
 0x383   :  { %315 = vrot.lane.b32.xlu2 %v313_v16, %s882_s5 }
 0x3dd   :  { %v316_v18 = vpop.permute.xlu2 %315 }
 0x3de   :  { %v318_v19 = vadd.f32 %v316_v18, %v308_v17  ;;  %v123_v18 = vld [vmem:[%s1143_s1 + $0x20] sm:$0xff] }
 0x3df   :  { %760 = vmatmul.msk.f32.gmra.mxu3 %vm128_vm0, %v123_v18 }
 0x3e0   :  { %804 = vtanh.f32 %v318_v19 }
 0x3e6   :  { %v805_v20 = vpop.eup %804 }
 0x3e7   :  { %321 = vrot.lane.b32.xlu0 %v805_v20, %s881_s3 }
 0x459   :  { %v322_v22 = vpop.permute.xlu0 %321 }
 0x45a   :  { %v324_v23 = vmul.f32 %v322_v22, %v307_v14 }
 0x45c   :  { %326 = vrot.lane.b32.xlu1 %v324_v23, %s882_s5 }
 0x462   :  { %v182_v22 = vpop.f32.mrf.mxu3 }
 0x463   :  { %v183_v23 = vadd.f32 %v957_v10, %v182_v22 }
 0x4ce   :  { %v327_v24 = vpop.permute.xlu1 %326 }
 0x4cf   :  { %767 = vmatmul.msk.f32.vlgmr.msrb.gmra.mxu2 %vm70_vm9, %v327_v24 }
 0x552   :  { %v347_v29 = vpop.f32.mrf.mxu2 }
 0x553   :  { %v350_v30 = vadd.f32 %v347_v29, %v177_v28 }
 0x555   :  { %v768_v31 = vmul.f32 -1.442695, %v350_v30 }
 0x557   :  { %806 = vpow2.f32 %v768_v31 }
 0x55d   :  { %v807_v32 = vpop.eup %806 }
 0x55e   :  { %v355_v33 = vadd.f32 1.0, %v807_v32 }
 0x560   :  { %808 = vrcp.f32 %v355_v33  ;;  %v367_v37 = vand.u32 2147483648, %v355_v33  ;;  %v365_v39 = vand.u32 2147483647, %v355_v33  ;;  %vm361_vm15 = vweird.f32 %v355_v33 }
 0x561   :  { %810 = vtanh.f32 %v350_v30 }
 0x562   :  { %v368_v41 = vor.u32 1.1754944e-38, %v367_v37  ;;  %vm366_vm2 = vcmp.eq.f32.partialorder %v365_v39, 8.507059e+37 }
 0x566   :  { %v809_v34 = vpop.eup %808 }
 0x567   :  { %v357_v35 = vmul.f32 %v809_v34, %v355_v33  ;;  %vm362_vm14 = vweird.f32 %v809_v34  ;;  %v811_v43 = vpop.eup %810 }
 0x568   :  { %vm363_vm1 = vmor %vm361_vm15, %vm362_vm14 }
 0x569   :  { %v358_v36 = vsub.f32 1.0, %v357_v35 }
 0x56b   :  { %v359_v38 = vmul.f32 %v809_v34, %v358_v36 }
 0x56d   :  { %v360_v40 = vadd.f32 %v809_v34, %v359_v38 }
 0x56f   :  { %v364_v42 = vsel %vm363_vm1, %v809_v34, %v360_v40 }
 0x570   :  { %v369_v44 = vsel %vm366_vm2, %v368_v41, %v364_v42 }
 0x571   :  { %v371_v45 = vsel %vm960_vm4, %v811_v43, %v369_v44 }
 0x572   :  { %374 = vrot.lane.b32.xlu2 %v371_v45, %s881_s3  ;;  %v372_v48 = vmul.f32 %v371_v45, %v318_v19 }
 0x5cc   :  { %v375_v46 = vpop.permute.xlu2 %374 }
 0x5cd   :  { %v377_v47 = vmul.f32 %v375_v46, %v371_v45 }
 0x5cf   :  { %379 = vrot.lane.b32.xlu0 %v377_v47, %s882_s5 }
 0x641   :  { %v380_v49 = vpop.permute.xlu0 %379 }
 0x642   :  { %v382_v50 = vadd.f32 %v380_v49, %v372_v48  ;;  %v124_v49 = vld [vmem:[%s1143_s1 + $0x28] sm:$0xff] }
 0x643   :  { %761 = vmatmul.msk.f32.gmra.mxu3 %vm128_vm0, %v124_v49 }
 0x644   :  { %812 = vtanh.f32 %v382_v50 }
 0x64a   :  { %v813_v51 = vpop.eup %812 }
 0x64b   :  { %385 = vrot.lane.b32.xlu1 %v813_v51, %s881_s3 }
 0x6bd   :  { %v386_v53 = vpop.permute.xlu1 %385 }
 0x6be   :  { %v388_v54 = vmul.f32 %v386_v53, %v371_v45 }
 0x6c0   :  { %390 = vrot.lane.b32.xlu2 %v388_v54, %s882_s5 }
 0x6c6   :  { %v185_v53 = vpop.f32.mrf.mxu3 }
 0x6c7   :  { %v186_v54 = vadd.f32 %v957_v10, %v185_v53 }
 0x71a   :  { %v391_v55 = vpop.permute.xlu2 %390 }
 0x71b   :  { %769 = vmatmul.msk.f32.vlgmr.msra.gmra.mxu0 %vm70_vm9, %v391_v55 }
 0x798   :  { %v411_v58 = vpop.f32.mrf.mxu0 }
 0x799   :  { %v414_v59 = vadd.f32 %v411_v58, %v180_v57 }
 0x79b   :  { %v770_v60 = vmul.f32 -1.442695, %v414_v59 }
 0x79d   :  { %814 = vpow2.f32 %v770_v60 }
 0x7a3   :  { %v815_v61 = vpop.eup %814 }
 0x7a4   :  { %v419_v62 = vadd.f32 1.0, %v815_v61 }
 0x7a6   :  { %816 = vrcp.f32 %v419_v62  ;;  %v431_v2 = vand.u32 2147483648, %v419_v62  ;;  %v429_v6 = vand.u32 2147483647, %v419_v62  ;;  %vm425_vm5 = vweird.f32 %v419_v62 }
 0x7a7   :  { %818 = vtanh.f32 %v414_v59 }
 0x7a8   :  { %v432_v4 = vor.u32 1.1754944e-38, %v431_v2  ;;  %vm430_vm7 = vcmp.eq.f32.partialorder %v429_v6, 8.507059e+37 }
 0x7ac   :  { %v817_v63 = vpop.eup %816 }
 0x7ad   :  { %v421_v0 = vmul.f32 %v817_v63, %v419_v62  ;;  %vm426_vm3 = vweird.f32 %v817_v63  ;;  %v819_v11 = vpop.eup %818 }
 0x7ae   :  { %vm427_vm6 = vmor %vm425_vm5, %vm426_vm3 }
 0x7af   :  { %v422_v1 = vsub.f32 1.0, %v421_v0 }
 0x7b1   :  { %v423_v3 = vmul.f32 %v817_v63, %v422_v1 }
 0x7b3   :  { %v424_v7 = vadd.f32 %v817_v63, %v423_v3 }
 0x7b5   :  { %v428_v8 = vsel %vm427_vm6, %v817_v63, %v424_v7 }
 0x7b6   :  { %v433_v5 = vsel %vm430_vm7, %v432_v4, %v428_v8 }
 0x7b7   :  { %v435_v9 = vsel %vm960_vm4, %v819_v11, %v433_v5 }
 0x7b8   :  { %438 = vrot.lane.b32.xlu0 %v435_v9, %s881_s3  ;;  %v436_v14 = vmul.f32 %v435_v9, %v382_v50 }
 0x82a   :  { %v439_v12 = vpop.permute.xlu0 %438 }
 0x82b   :  { %v441_v13 = vmul.f32 %v439_v12, %v435_v9 }
 0x82d   :  { %443 = vrot.lane.b32.xlu1 %v441_v13, %s882_s5 }
 0x89f   :  { %v444_v15 = vpop.permute.xlu1 %443 }
 0x8a0   :  { %v446_v16 = vadd.f32 %v444_v15, %v436_v14  ;;  %v125_v15 = vld [vmem:[%s1143_s1 + $0x30] sm:$0xff] }
 0x8a1   :  { %762 = vmatmul.msk.f32.gmra.mxu3 %vm128_vm0, %v125_v15 }
 0x8a2   :  { %820 = vtanh.f32 %v446_v16 }
 0x8a8   :  { %v821_v17 = vpop.eup %820 }
 0x8a9   :  { %449 = vrot.lane.b32.xlu2 %v821_v17, %s881_s3 }
 0x903   :  { %v450_v19 = vpop.permute.xlu2 %449 }
 0x904   :  { %v452_v20 = vmul.f32 %v450_v19, %v435_v9 }
 0x906   :  { %454 = vrot.lane.b32.xlu0 %v452_v20, %s882_s5 }
 0x924   :  { %v188_v19 = vpop.f32.mrf.mxu3 }
 0x925   :  { %v189_v20 = vadd.f32 %v957_v10, %v188_v19 }
 0x978   :  { %v455_v21 = vpop.permute.xlu0 %454 }
 0x979   :  { %771 = vmatmul.msk.f32.vlgmr.msrb.gmra.mxu1 %vm70_vm9, %v455_v21 }
 0x9f6   :  { %v475_v24 = vpop.f32.mrf.mxu1 }
 0x9f7   :  { %v478_v27 = vadd.f32 %v475_v24, %v183_v23 }
 0x9f9   :  { %v772_v28 = vmul.f32 -1.442695, %v478_v27 }
 0x9fb   :  { %822 = vpow2.f32 %v772_v28 }
 0xa01   :  { %v823_v29 = vpop.eup %822 }
 0xa02   :  { %v483_v30 = vadd.f32 1.0, %v823_v29 }
 0xa04   :  { %824 = vrcp.f32 %v483_v30  ;;  %v495_v34 = vand.u32 2147483648, %v483_v30  ;;  %v493_v36 = vand.u32 2147483647, %v483_v30  ;;  %vm489_vm10 = vweird.f32 %v483_v30 }
 0xa05   :  { %826 = vtanh.f32 %v478_v27 }
 0xa06   :  { %v496_v38 = vor.u32 1.1754944e-38, %v495_v34  ;;  %vm494_vm12 = vcmp.eq.f32.partialorder %v493_v36, 8.507059e+37 }
 0xa0a   :  { %v825_v31 = vpop.eup %824 }
 0xa0b   :  { %v485_v32 = vmul.f32 %v825_v31, %v483_v30  ;;  %vm490_vm8 = vweird.f32 %v825_v31  ;;  %v827_v40 = vpop.eup %826 }
 0xa0c   :  { %vm491_vm11 = vmor %vm489_vm10, %vm490_vm8 }
 0xa0d   :  { %v486_v33 = vsub.f32 1.0, %v485_v32 }
 0xa0f   :  { %v487_v35 = vmul.f32 %v825_v31, %v486_v33 }
 0xa11   :  { %v488_v37 = vadd.f32 %v825_v31, %v487_v35 }
 0xa13   :  { %v492_v39 = vsel %vm491_vm11, %v825_v31, %v488_v37 }
 0xa14   :  { %v497_v41 = vsel %vm494_vm12, %v496_v38, %v492_v39 }
 0xa15   :  { %v499_v42 = vsel %vm960_vm4, %v827_v40, %v497_v41 }
 0xa16   :  { %502 = vrot.lane.b32.xlu1 %v499_v42, %s881_s3  ;;  %v500_v45 = vmul.f32 %v499_v42, %v446_v16 }
 0xa88   :  { %v503_v43 = vpop.permute.xlu1 %502 }
 0xa89   :  { %v505_v44 = vmul.f32 %v503_v43, %v499_v42 }
 0xa8b   :  { %507 = vrot.lane.b32.xlu2 %v505_v44, %s882_s5 }
 0xae5   :  { %v508_v46 = vpop.permute.xlu2 %507 }
 0xae6   :  { %v510_v47 = vadd.f32 %v508_v46, %v500_v45  ;;  %v126_v46 = vld [vmem:[%s1143_s1 + $0x38] sm:$0xff] }
 0xae7   :  { %763 = vmatmul.msk.f32.gmra.mxu3 %vm128_vm0, %v126_v46 }
 0xae8   :  { %828 = vtanh.f32 %v510_v47 }
 0xaee   :  { %v829_v48 = vpop.eup %828 }
 0xaef   :  { %513 = vrot.lane.b32.xlu0 %v829_v48, %s881_s3 }
 0xb61   :  { %v514_v50 = vpop.permute.xlu0 %513 }
 0xb62   :  { %v516_v51 = vmul.f32 %v514_v50, %v499_v42 }
 0xb64   :  { %518 = vrot.lane.b32.xlu1 %v516_v51, %s882_s5 }
 0xb6a   :  { %v191_v50 = vpop.f32.mrf.mxu3 }
 0xb6b   :  { %v192_v51 = vadd.f32 %v957_v10, %v191_v50 }
 0xbd6   :  { %v519_v52 = vpop.permute.xlu1 %518 }
 0xbd7   :  { %773 = vmatmul.msk.f32.vlgmr.msra.gmra.mxu2 %vm70_vm9, %v519_v52 }
 0xc5a   :  { %v539_v55 = vpop.f32.mrf.mxu2 }
 0xc5b   :  { %v542_v56 = vadd.f32 %v539_v55, %v186_v54 }
 0xc5d   :  { %v774_v57 = vmul.f32 -1.442695, %v542_v56 }
 0xc5f   :  { %830 = vpow2.f32 %v774_v57 }
 0xc65   :  { %v831_v58 = vpop.eup %830 }
 0xc66   :  { %v547_v59 = vadd.f32 1.0, %v831_v58 }
 0xc68   :  { %832 = vrcp.f32 %v547_v59  ;;  %v559_v63 = vand.u32 2147483648, %v547_v59  ;;  %v557_v1 = vand.u32 2147483647, %v547_v59  ;;  %vm553_vm14 = vweird.f32 %v547_v59 }
 0xc69   :  { %834 = vtanh.f32 %v542_v56 }
 0xc6a   :  { %v560_v3 = vor.u32 1.1754944e-38, %v559_v63  ;;  %vm558_vm1 = vcmp.eq.f32.partialorder %v557_v1, 8.507059e+37 }
 0xc6e   :  { %v833_v60 = vpop.eup %832 }
 0xc6f   :  { %v549_v61 = vmul.f32 %v833_v60, %v547_v59  ;;  %vm554_vm13 = vweird.f32 %v833_v60  ;;  %v835_v7 = vpop.eup %834 }
 0xc70   :  { %vm555_vm15 = vmor %vm553_vm14, %vm554_vm13 }
 0xc71   :  { %v550_v62 = vsub.f32 1.0, %v549_v61 }
 0xc73   :  { %v551_v0 = vmul.f32 %v833_v60, %v550_v62 }
 0xc75   :  { %v552_v2 = vadd.f32 %v833_v60, %v551_v0 }
 0xc77   :  { %v556_v6 = vsel %vm555_vm15, %v833_v60, %v552_v2 }
 0xc78   :  { %v561_v4 = vsel %vm558_vm1, %v560_v3, %v556_v6 }
 0xc79   :  { %v563_v8 = vsel %vm960_vm4, %v835_v7, %v561_v4 }
 0xc7a   :  { %566 = vrot.lane.b32.xlu2 %v563_v8, %s881_s3  ;;  %v564_v9 = vmul.f32 %v563_v8, %v510_v47 }
 0xcd4   :  { %v567_v11 = vpop.permute.xlu2 %566 }
 0xcd5   :  { %v569_v5 = vmul.f32 %v567_v11, %v563_v8 }
 0xcd7   :  { %571 = vrot.lane.b32.xlu0 %v569_v5, %s882_s5 }
 0xd49   :  { %v572_v12 = vpop.permute.xlu0 %571 }
 0xd4a   :  { %v574_v13 = vadd.f32 %v572_v12, %v564_v9  ;;  %v34_v9 = vld [vmem:[%s1144_s2 + $0x80] sm:$0xff]  ;;  %v32_v12 = vld [vmem:[%s1144_s2 + $0x70] sm:$0xff] }
 0xd4b   :  { %727 = vmatpush.msrb.mxu2 %v34_v9 }
 0xd4c   :  { %836 = vtanh.f32 %v574_v13 }
 0xd4d   :  { %728 = vmatpush.msrb.mxu2 %v33_v25 }
 0xd4f   :  { %729 = vmatpush.msrb.mxu2 %v32_v12 }
 0xd52   :  { %v837_v14 = vpop.eup %836 }
 0xd53   :  { %577 = vrot.lane.b32.xlu1 %v837_v14, %s881_s3 }
 0xdc5   :  { %v578_v16 = vpop.permute.xlu1 %577 }
 0xdc6   :  { %v580_v17 = vmul.f32 %v578_v16, %v563_v8 }
 0xdc8   :  { %582 = vrot.lane.b32.xlu2 %v580_v17, %s882_s5  ;;  %v788_v17 = vld [vmem:[%s1144_s2 + $0x60] ss:$0 sm:$0xff] }
 0xe22   :  { %v583_v18 = vpop.permute.xlu2 %582 }
 0xe23   :  { %775 = vmatmul.msk.f32.vlgmr.msrb.gmra.mxu0 %vm70_vm9, %v583_v18  ;;  %v789_v18 = vld [vmem:[%s1144_s2 + $0x88] ss:$0 sm:$0xff] }
 0xea0   :  { %v603_v21 = vpop.f32.mrf.mxu0 }
 0xea1   :  { %v606_v22 = vadd.f32 %v603_v21, %v189_v20  ;;  %v117_v20 = vadd.f32 %v788_v17, %v1049_v26 }
 0xea3   :  { %v776_v23 = vmul.f32 -1.442695, %v606_v22 }
 0xea5   :  { %838 = vpow2.f32 %v776_v23 }
 0xeab   :  { %v839_v24 = vpop.eup %838 }
 0xeac   :  { %v611_v27 = vadd.f32 1.0, %v839_v24 }
 0xeae   :  { %840 = vrcp.f32 %v611_v27  ;;  %v623_v31 = vand.u32 2147483648, %v611_v27  ;;  %v621_v33 = vand.u32 2147483647, %v611_v27  ;;  %vm617_vm3 = vweird.f32 %v611_v27 }
 0xeaf   :  { %842 = vtanh.f32 %v606_v22 }
 0xeb0   :  { %v624_v35 = vor.u32 1.1754944e-38, %v623_v31  ;;  %vm622_vm6 = vcmp.eq.f32.partialorder %v621_v33, 8.507059e+37 }
 0xeb4   :  { %v841_v28 = vpop.eup %840 }
 0xeb5   :  { %v613_v29 = vmul.f32 %v841_v28, %v611_v27  ;;  %vm618_vm2 = vweird.f32 %v841_v28  ;;  %v843_v37 = vpop.eup %842 }
 0xeb6   :  { %vm619_vm5 = vmor %vm617_vm3, %vm618_vm2 }
 0xeb7   :  { %v614_v30 = vsub.f32 1.0, %v613_v29 }
 0xeb9   :  { %v615_v32 = vmul.f32 %v841_v28, %v614_v30 }
 0xebb   :  { %v616_v34 = vadd.f32 %v841_v28, %v615_v32 }
 0xebd   :  { %v620_v36 = vsel %vm619_vm5, %v841_v28, %v616_v34 }
 0xebe   :  { %v625_v38 = vsel %vm622_vm6, %v624_v35, %v620_v36 }
 0xebf   :  { %v627_v39 = vsel %vm960_vm4, %v843_v37, %v625_v38 }
 0xec0   :  { %630 = vrot.lane.b32.xlu0 %v627_v39, %s881_s3  ;;  %v628_v42 = vmul.f32 %v627_v39, %v574_v13  ;;  %v31_v13 = vld [vmem:[%s1144_s2 + $0x68] sm:$0xff] }
 0xec1   :  { %730 = vmatpush.msrb.mxu2 %v31_v13 }
 0xf32   :  { %v631_v40 = vpop.permute.xlu0 %630 }
 0xf33   :  { %v633_v41 = vmul.f32 %v631_v40, %v627_v39 }
 0xf35   :  { %635 = vrot.lane.b32.xlu1 %v633_v41, %s882_s5 }
 0xfa7   :  { %v636_v43 = vpop.permute.xlu1 %635 }
 0xfa8   :  { %v638_v44 = vadd.f32 %v636_v43, %v628_v42 }
 0xfaa   :  { %844 = vtanh.f32 %v638_v44 }
 0xfb0   :  { %v845_v45 = vpop.eup %844 }
 0xfb1   :  { %641 = vrot.lane.b32.xlu2 %v845_v45, %s881_s3 }
0x100b   :  { %v642_v47 = vpop.permute.xlu2 %641 }
0x100c   :  { %v644_v48 = vmul.f32 %v642_v47, %v627_v39 }
0x100e   :  { %646 = vrot.lane.b32.xlu0 %v644_v48, %s882_s5 }
0x1080   :  { %v647_v49 = vpop.permute.xlu0 %646 }
0x1081   :  { %777 = vmatmul.msk.f32.vlgmr.msra.gmra.mxu1 %vm70_vm9, %v647_v49 }
0x10fe   :  { %v667_v52 = vpop.f32.mrf.mxu1 }
0x10ff   :  { %v670_v53 = vadd.f32 %v667_v52, %v192_v51 }
0x1101   :  { %v778_v54 = vmul.f32 -1.442695, %v670_v53 }
0x1103   :  { %846 = vpow2.f32 %v778_v54 }
0x1109   :  { %v847_v55 = vpop.eup %846 }
0x110a   :  { %v675_v56 = vadd.f32 1.0, %v847_v55 }
0x110c   :  { %848 = vrcp.f32 %v675_v56  ;;  %v687_v60 = vand.u32 2147483648, %v675_v56  ;;  %v685_v62 = vand.u32 2147483647, %v675_v56  ;;  %vm681_vm7 = vweird.f32 %v675_v56 }
0x110d   :  { %850 = vtanh.f32 %v670_v53 }
0x110e   :  { %v688_v0 = vor.u32 1.1754944e-38, %v687_v60  ;;  %vm686_vm10 = vcmp.eq.f32.partialorder %v685_v62, 8.507059e+37 }
0x1112   :  { %v849_v57 = vpop.eup %848 }
0x1113   :  { %v677_v58 = vmul.f32 %v849_v57, %v675_v56  ;;  %vm682_vm0 = vweird.f32 %v849_v57  ;;  %v851_v1 = vpop.eup %850 }
0x1114   :  { %vm683_vm8 = vmor %vm681_vm7, %vm682_vm0 }
0x1115   :  { %v678_v59 = vsub.f32 1.0, %v677_v58 }
0x1117   :  { %v679_v61 = vmul.f32 %v849_v57, %v678_v59 }
0x1119   :  { %v680_v63 = vadd.f32 %v849_v57, %v679_v61 }
0x111b   :  { %v684_v10 = vsel %vm683_vm8, %v849_v57, %v680_v63 }
0x111c   :  { %v689_v2 = vsel %vm686_vm10, %v688_v0, %v684_v10 }
0x111d   :  { %v691_v3 = vsel %vm960_vm4, %v851_v1, %v689_v2 }
0x111e   :  { %694 = vrot.lane.b32.xlu1 %v691_v3, %s881_s3  ;;  %v692_v4 = vmul.f32 %v691_v3, %v638_v44 }
0x1190   :  { %v695_v6 = vpop.permute.xlu1 %694 }
0x1191   :  { %v697_v7 = vmul.f32 %v695_v6, %v691_v3 }
0x1193   :  { %699 = vrot.lane.b32.xlu2 %v697_v7, %s882_s5 }
0x11ed   :  { %v700_v8 = vpop.permute.xlu2 %699 }
0x11ee   :  { %v702_v11 = vadd.f32 %v700_v8, %v692_v4 }
0x11f0   :  { %852 = vtanh.f32 %v702_v11 }
0x11f6   :  { %v853_v5 = vpop.eup %852 }
0x11f7   :  { %705 = vrot.lane.b32.xlu0 %v853_v5, %s881_s3 }
0x1269   :  { %v706_v14 = vpop.permute.xlu0 %705 }
0x126a   :  { %v708_v15 = vmul.f32 %v706_v14, %v691_v3 }
0x126c   :  { %711 = vrot.lane.b32.xlu1 %v708_v15, %s882_s5 }
0x12de   :  { %v712_v16 = vpop.permute.xlu1 %711 }
0x12df   :  { %779 = vmatmul.msk.f32.vlgmr.msrb.gmra.mxu2 %vm70_vm9, %v712_v16 }
0x1362   :  { %v732_v19 = vpop.f32.mrf.mxu2 }
0x1363   :  { %v733_v21 = vadd.f32 %v789_v18, %v732_v19 }
0x1365   :  { %v735_v22 = vadd.f32 %v733_v21, %v117_v20 }
0x1367   :  { %736 = vst.msk [vmem:[#allocation2] sm:$0xff] %vm70_vm9, %v735_v22 }
0x1368   :  { %747 = dma.vmem_to_hbm [thread:$0]  %s743_s28, 128, %s745_s6, [#allocation3]  }
0x1369   :  { %878 = dma.done.wait [#allocation3], 128  }
0x136a   :  { %879 = vsyncadd [#allocation3], 4294967168 }
0x136b   :  { %752 = vsyncpa [#allocation3], 1 }

</bundles_post_ra>
